<compile_context>
chip_gen: v6e
topology: v6e:2x2x1
jax: 0.10.0
libtpu: 0.0.40
codegen_flags: <defaults>
</compile_context>

<pallas_src>
import jax
import jax.numpy as jnp
from jax import lax
from jax.experimental import pallas as pl
from jax.experimental.pallas import tpu as pltpu


def _planes_per_block(n_planes, bytes_per_plane, max_planes, budget_bytes):
    """Largest divisor of n_planes (<= max_planes) whose block fits the budget."""
    best = 1
    for d in range(1, max_planes + 1):
        if n_planes % d == 0 and d * bytes_per_plane <= budget_bytes:
            best = d
    return best


# -----------------------------------------------------------------------------
# Fast path: one gather-DMA per plane-block, HBM crop window -> output block.
# -----------------------------------------------------------------------------
def _dma_crop_kernel(tl_ref, img_hbm, out_ref, sem):
    """Copy the crop window for this plane-block straight from HBM.

    tl_ref : SMEM int32[2] = (top, left)            (scalar prefetch)
    img_hbm: full (n_planes, H_p, W_p) input, left in HBM (memory_space=ANY)
    out_ref: VMEM (pb, crop_h, crop_w) output block  (auto-pipelined writeback)
    sem    : DMA completion semaphore
    """
    top = tl_ref[0]
    left = tl_ref[1]
    pb, crop_h, crop_w = out_ref.shape
    base = pl.program_id(0) * pb
    cp = pltpu.make_async_copy(
        img_hbm.at[pl.ds(base, pb), pl.ds(top, crop_h), pl.ds(left, crop_w)],
        out_ref,
        sem)
    cp.start()
    cp.wait()


def _crop_via_dma(planes, top_left, crop_h, crop_w):
    n_planes, h_p, w_p = planes.shape
    itemsize = jnp.dtype(planes.dtype).itemsize
    pb = _planes_per_block(n_planes,
                           bytes_per_plane=crop_h * crop_w * itemsize,
                           max_planes=32, budget_bytes=8 << 20)
    grid = (n_planes // pb,)
    return pl.pallas_call(
        _dma_crop_kernel,
        out_shape=jax.ShapeDtypeStruct((n_planes, crop_h, crop_w), planes.dtype),
        grid_spec=pltpu.PrefetchScalarGridSpec(
            num_scalar_prefetch=1,                       # top_left -> SMEM
            grid=grid,
            in_specs=[pl.BlockSpec(memory_space=pl.ANY)],  # stay in HBM, DMA manually
            out_specs=pl.BlockSpec((pb, crop_h, crop_w),
                                   lambda i, tl: (i, 0, 0)),
            scratch_shapes=[pltpu.SemaphoreType.DMA],
        ),
        compiler_params=pltpu.CompilerParams(
            dimension_semantics=("parallel",),           # independent plane blocks
            vmem_limit_bytes=32 * 1024 * 1024,
        ),
    )(top_left, planes)


# -----------------------------------------------------------------------------
# Fallback path (previously validated): full-plane pipeline + one-hot matmuls.
# -----------------------------------------------------------------------------
def _mxu_crop_kernel(tl_ref, img_ref, out_ref):
    """Crop a block of image planes by the (top, left) offsets in SMEM.

    tl_ref : SMEM int32[2] = (top, left)            (scalar prefetch)
    img_ref: VMEM (pb, H_p, W_p)       input planes  (lane dim = W_p, dense)
    out_ref: VMEM (pb, crop_h, crop_w) output crops  (lane dim = crop_w, dense)
    """
    top = tl_ref[0]
    left = tl_ref[1]
    pb, h_p, w_p = img_ref.shape
    _, crop_h, crop_w = out_ref.shape

    # One-hot selection matrices (built once per grid step).
    #   sel_h[p, h] = 1.0  iff  h == top  + p        -> picks the crop rows
    #   sel_w[w, q] = 1.0  iff  w == left + q        -> picks the crop cols
    hh = lax.broadcasted_iota(jnp.int32, (crop_h, h_p), 1)
    pp = lax.broadcasted_iota(jnp.int32, (crop_h, h_p), 0)
    sel_h = (hh == pp + top).astype(jnp.float32)

    ww = lax.broadcasted_iota(jnp.int32, (w_p, crop_w), 0)
    qq = lax.broadcasted_iota(jnp.int32, (w_p, crop_w), 1)
    sel_w = (ww == qq + left).astype(jnp.float32)

    # Static unroll over planes: two small MXU matmuls each (MXU is idle anyway;
    # this kernel is DMA-bound).
    for j in range(pb):
        x = img_ref[j].astype(jnp.float32)                           # (h_p, w_p)
        xc = jnp.dot(x, sel_w, preferred_element_type=jnp.float32)   # (h_p, crop_w)
        y = jnp.dot(sel_h, xc, preferred_element_type=jnp.float32)   # (crop_h, crop_w)
        out_ref[j] = y.astype(out_ref.dtype)


def _crop_via_mxu(planes, top_left, crop_h, crop_w):
    n_planes, h_p, w_p = planes.shape
    itemsize = jnp.dtype(planes.dtype).itemsize
    pb = _planes_per_block(n_planes,
                           bytes_per_plane=(h_p * w_p + crop_h * crop_w) * itemsize,
                           max_planes=8, budget_bytes=4 << 20)
    grid = (n_planes // pb,)
    return pl.pallas_call(
        _mxu_crop_kernel,
        out_shape=jax.ShapeDtypeStruct((n_planes, crop_h, crop_w), planes.dtype),
        grid_spec=pltpu.PrefetchScalarGridSpec(
            num_scalar_prefetch=1,
            grid=grid,
            in_specs=[pl.BlockSpec((pb, h_p, w_p), lambda i, tl: (i, 0, 0))],
            out_specs=pl.BlockSpec((pb, crop_h, crop_w), lambda i, tl: (i, 0, 0)),
        ),
        compiler_params=pltpu.CompilerParams(
            dimension_semantics=("parallel",),
            vmem_limit_bytes=32 * 1024 * 1024,
        ),
    )(top_left, planes)


# -----------------------------------------------------------------------------
# Dispatch: probe the gather-DMA fast path once per configuration, fall back to
# the validated MXU kernel if the Mosaic release rejects arbitrary-offset DMA
# slicing (or the probe result mismatches).  Decision is cached.
# -----------------------------------------------------------------------------
_IMPL_CACHE = {}


def _crop_planes(planes, top, left, crop_h, crop_w):
    n_planes, h_p, w_p = planes.shape
    top_left = jnp.stack([jnp.int32(top), jnp.int32(left)])
    key = (n_planes, h_p, w_p, crop_h, crop_w, str(planes.dtype))
    impl = _IMPL_CACHE.get(key)
    if impl == "dma":
        return _crop_via_dma(planes, top_left, crop_h, crop_w)
    if impl == "mxu":
        return _crop_via_mxu(planes, top_left, crop_h, crop_w)

    try:
        out = jax.block_until_ready(_crop_via_dma(planes, top_left, crop_h, crop_w))
        ref = lax.dynamic_slice(planes,
                                (jnp.int32(0), jnp.int32(top), jnp.int32(left)),
                                (n_planes, crop_h, crop_w))
        if bool(jnp.allclose(out, ref)):
            _IMPL_CACHE[key] = "dma"
            return out
    except Exception:   # lowering / runtime limitation -> use the proven path
        pass
    _IMPL_CACHE[key] = "mxu"
    return _crop_via_mxu(planes, top_left, crop_h, crop_w)


def random_patch_crop(img_nchw, size, key):
    """JAX/Pallas equivalent of RandomPatchCrop.forward.

    Args:
      img_nchw: float array (B, C, H, W)  -- PyTorch NCHW convention.
      size: int or (h, w) crop size.
      key: jax PRNG key (replaces the np.random host RNG).

    Returns:
      cropped image (B, C, size_h, size_w) and the (top, left) offsets used.
    """
    if isinstance(size, tuple):
        crop_h, crop_w = (size if len(size) == 2 else (size[0], size[0]))
    else:
        crop_h, crop_w = size, size

    b, c, h, w = img_nchw.shape
    x = img_nchw

    # pad_if_needed with torchvision 'symmetric' padding (== numpy 'symmetric');
    # same order as the original module: W first, then H.
    if w < crop_w:
        pw = crop_w - w
        x = jnp.pad(x, ((0, 0), (0, 0), (0, 0), (pw, pw)), mode="symmetric")
    if h < crop_h:
        ph = crop_h - h
        x = jnp.pad(x, ((0, 0), (0, 0), (ph, ph), (0, 0)), mode="symmetric")
    _, _, h_p, w_p = x.shape

    # np.random.randint(0, hi) is exclusive-high; reproduce that exactly.
    k1, k2 = jax.random.split(key)
    top = (jax.random.randint(k1, (), 0, h_p - crop_h, dtype=jnp.int32)
           if h_p > crop_h else jnp.int32(0))
    left = (jax.random.randint(k2, (), 0, w_p - crop_w, dtype=jnp.int32)
            if w_p > crop_w else jnp.int32(0))

    # Free reshape: (B, C, H_p, W_p) -> (B*C, H_p, W_p). Keeps (H, W) as the
    # tiled (sublane, lane) pair -> lane-dense data, no wrapper transposes.
    planes = x.reshape(b * c, h_p, w_p)

    out3 = _crop_planes(planes, top, left, crop_h, crop_w)
    out_nchw = out3.reshape(b, c, crop_h, crop_w)
    return out_nchw, (top, left)


if __name__ == "__main__":
    key = jax.random.PRNGKey(0)
    k_img, k_crop = jax.random.split(key)

    # Small shapes consistent with the module: batch=2, channels=4, spatial=16,
    # crop size (8, 8).  H, W > crop -> exercises the random-offset path.
    img = jax.random.normal(k_img, (2, 4, 16, 16), dtype=jnp.float32)
    crop_size = (8, 8)

    out, (top, left) = random_patch_crop(img, crop_size, k_crop)
    out = jax.block_until_ready(out)

    # Reference check (plain JAX dynamic_slice with the same offsets).
    ref = lax.dynamic_slice(
        img, (0, 0, top, left), (img.shape[0], img.shape[1]) + crop_size)
    assert out.shape == (2, 4, 8, 8), out.shape
    assert out.dtype == img.dtype
    assert bool(jnp.allclose(out, ref, atol=1e-6)), "Pallas crop mismatch vs reference"

    print("KERNEL_OK")
</pallas_src>

<mosaic_0001>
module attributes {stable_mosaic.version = 11 : i64} {
  func.func @_dma_crop_kernel(%arg0: i32, %arg1: memref<2xi32, #tpu.memory_space<smem>>, %arg2: memref<8x16x16xf32, #tpu.memory_space<any>>, %arg3: memref<8x8x8xf32, #tpu.memory_space<vmem>>, %arg4: memref<!tpu.dma_semaphore, #tpu.memory_space<semaphore_mem>>) attributes {dimension_semantics = [#tpu.dimension_semantics<parallel>], iteration_bounds = array<i64: 1>, scalar_prefetch = 1 : i64, scratch_operands = 1 : i64, tpu.core_type = #tpu.core_type<tc>, window_params = [{}, {transform_indices = @transform_1, window_bounds = array<i64: 8, 8, 8>}]} {
    %c0 = arith.constant 0 : index
    %0 = memref.load %arg1[%c0] : memref<2xi32, #tpu.memory_space<smem>>
    %c1 = arith.constant 1 : index
    %1 = memref.load %arg1[%c1] : memref<2xi32, #tpu.memory_space<smem>>
    %c8_i32 = arith.constant 8 : i32
    %2 = arith.muli %arg0, %c8_i32 : i32
    %3 = tpu.memref_slice %arg2[%2, %0, %1] : memref<8x16x16xf32, #tpu.memory_space<any>> -> memref<8x8x8xf32, #tpu.memory_space<any>>
    tpu.enqueue_dma source(%3 : memref<8x8x8xf32, #tpu.memory_space<any>>) target(%arg3 : memref<8x8x8xf32, #tpu.memory_space<vmem>>) target_semaphore(%arg4 : memref<!tpu.dma_semaphore, #tpu.memory_space<semaphore_mem>>)
    %4 = tpu.memref_slice %arg2[%2, %0, %1] : memref<8x16x16xf32, #tpu.memory_space<any>> -> memref<8x8x8xf32, #tpu.memory_space<any>>
    tpu.wait_dma2 semaphore(%arg4 : memref<!tpu.dma_semaphore, #tpu.memory_space<semaphore_mem>>) src(%4 : memref<8x8x8xf32, #tpu.memory_space<any>>) dst(%arg3 : memref<8x8x8xf32, #tpu.memory_space<vmem>>)
    return
  }
  func.func @transform_1(%arg0: i32, %arg1: memref<2xi32, #tpu.memory_space<smem>>) -> (i32, i32, i32) {
    %c0_i32 = arith.constant 0 : i32
    %c0_i32_0 = arith.constant 0 : i32
    %c0_i32_1 = arith.constant 0 : i32
    return %arg0, %c0_i32, %c0_i32_0 : i32, i32, i32
  }
}

module attributes {stable_mosaic.version = 11 : i64} {
  func.func @_mxu_crop_kernel(%arg0: i32, %arg1: memref<2xi32, #tpu.memory_space<smem>>, %arg2: memref<8x16x16xf32, #tpu.memory_space<vmem>>, %arg3: memref<8x8x8xf32, #tpu.memory_space<vmem>>) attributes {dimension_semantics = [#tpu.dimension_semantics<parallel>], iteration_bounds = array<i64: 1>, scalar_prefetch = 1 : i64, scratch_operands = 0 : i64, tpu.core_type = #tpu.core_type<tc>, window_params = [{transform_indices = @transform_0, window_bounds = array<i64: 8, 16, 16>}, {transform_indices = @transform_1, window_bounds = array<i64: 8, 8, 8>}]} {
    %c0 = arith.constant 0 : index
    %0 = memref.load %arg1[%c0] : memref<2xi32, #tpu.memory_space<smem>>
    %c1 = arith.constant 1 : index
    %1 = memref.load %arg1[%c1] : memref<2xi32, #tpu.memory_space<smem>>
    %2 = tpu.iota {dimensions = array<i32: 1>} : vector<8x16xi32>
    %3 = tpu.iota {dimensions = array<i32: 0>} : vector<8x16xi32>
    %4 = vector.broadcast %0 : i32 to vector<8x16xi32>
    %5 = arith.addi %3, %4 : vector<8x16xi32>
    %6 = arith.cmpi eq, %2, %5 : vector<8x16xi32>
    %7 = arith.extui %6 : vector<8x16xi1> to vector<8x16xi32>
    %8 = arith.sitofp %7 : vector<8x16xi32> to vector<8x16xf32>
    %9 = tpu.iota {dimensions = array<i32: 0>} : vector<16x8xi32>
    %10 = tpu.iota {dimensions = array<i32: 1>} : vector<16x8xi32>
    %11 = vector.broadcast %1 : i32 to vector<16x8xi32>
    %12 = arith.addi %10, %11 : vector<16x8xi32>
    %13 = arith.cmpi eq, %9, %12 : vector<16x8xi32>
    %14 = arith.extui %13 : vector<16x8xi1> to vector<16x8xi32>
    %15 = arith.sitofp %14 : vector<16x8xi32> to vector<16x8xf32>
    %c0_0 = arith.constant 0 : index
    %c0_1 = arith.constant 0 : index
    %c0_2 = arith.constant 0 : index
    %16 = vector.load %arg2[%c0_0, %c0_1, %c0_2] : memref<8x16x16xf32, #tpu.memory_space<vmem>>, vector<1x16x16xf32>
    %17 = vector.shape_cast %16 : vector<1x16x16xf32> to vector<16x16xf32>
    %cst = arith.constant dense<0.000000e+00> : vector<16x8xf32>
    %18 = tpu.matmul %17, %15, %cst {dimension_numbers = #tpu.dot_dimension_numbers<[1], [0], [0], [1], [0, 0, 1, 1], [], []>} : vector<16x16xf32>, vector<16x8xf32>, vector<16x8xf32> -> vector<16x8xf32>
    %cst_3 = arith.constant dense<0.000000e+00> : vector<8x8xf32>
    %19 = tpu.matmul %8, %18, %cst_3 {dimension_numbers = #tpu.dot_dimension_numbers<[1], [0], [0], [1], [0, 0, 1, 1], [], []>} : vector<8x16xf32>, vector<16x8xf32>, vector<8x8xf32> -> vector<8x8xf32>
    %c0_4 = arith.constant 0 : index
    %c0_5 = arith.constant 0 : index
    %c0_6 = arith.constant 0 : index
    %20 = vector.load %arg3[%c0_4, %c0_5, %c0_6] : memref<8x8x8xf32, #tpu.memory_space<vmem>>, vector<1x8x8xf32>
    %21 = vector.shape_cast %20 : vector<1x8x8xf32> to vector<8x8xf32>
    %22 = vector.shape_cast %19 : vector<8x8xf32> to vector<1x8x8xf32>
    tpu.vector_store %arg3[%c0_4, %c0_5, %c0_6], %22 {strides = array<i32>} : memref<8x8x8xf32, #tpu.memory_space<vmem>>, vector<1x8x8xf32>,
    %c1_7 = arith.constant 1 : index
    %c0_8 = arith.constant 0 : index
    %c0_9 = arith.constant 0 : index
    %23 = vector.load %arg2[%c1_7, %c0_8, %c0_9] : memref<8x16x16xf32, #tpu.memory_space<vmem>>, vector<1x16x16xf32>
    %24 = vector.shape_cast %23 : vector<1x16x16xf32> to vector<16x16xf32>
    %cst_10 = arith.constant dense<0.000000e+00> : vector<16x8xf32>
    %25 = tpu.matmul %24, %15, %cst_10 {dimension_numbers = #tpu.dot_dimension_numbers<[1], [0], [0], [1], [0, 0, 1, 1], [], []>} : vector<16x16xf32>, vector<16x8xf32>, vector<16x8xf32> -> vector<16x8xf32>
    %cst_11 = arith.constant dense<0.000000e+00> : vector<8x8xf32>
    %26 = tpu.matmul %8, %25, %cst_11 {dimension_numbers = #tpu.dot_dimension_numbers<[1], [0], [0], [1], [0, 0, 1, 1], [], []>} : vector<8x16xf32>, vector<16x8xf32>, vector<8x8xf32> -> vector<8x8xf32>
    %c1_12 = arith.constant 1 : index
    %c0_13 = arith.constant 0 : index
    %c0_14 = arith.constant 0 : index
    %27 = vector.load %arg3[%c1_12, %c0_13, %c0_14] : memref<8x8x8xf32, #tpu.memory_space<vmem>>, vector<1x8x8xf32>
    %28 = vector.shape_cast %27 : vector<1x8x8xf32> to vector<8x8xf32>
    %29 = vector.shape_cast %26 : vector<8x8xf32> to vector<1x8x8xf32>
    tpu.vector_store %arg3[%c1_12, %c0_13, %c0_14], %29 {strides = array<i32>} : memref<8x8x8xf32, #tpu.memory_space<vmem>>, vector<1x8x8xf32>,
    %c2 = arith.constant 2 : index
    %c0_15 = arith.constant 0 : index
    %c0_16 = arith.constant 0 : index
    %30 = vector.load %arg2[%c2, %c0_15, %c0_16] : memref<8x16x16xf32, #tpu.memory_space<vmem>>, vector<1x16x16xf32>
    %31 = vector.shape_cast %30 : vector<1x16x16xf32> to vector<16x16xf32>
    %cst_17 = arith.constant dense<0.000000e+00> : vector<16x8xf32>
    %32 = tpu.matmul %31, %15, %cst_17 {dimension_numbers = #tpu.dot_dimension_numbers<[1], [0], [0], [1], [0, 0, 1, 1], [], []>} : vector<16x16xf32>, vector<16x8xf32>, vector<16x8xf32> -> vector<16x8xf32>
    %cst_18 = arith.constant dense<0.000000e+00> : vector<8x8xf32>
    %33 = tpu.matmul %8, %32, %cst_18 {dimension_numbers = #tpu.dot_dimension_numbers<[1], [0], [0], [1], [0, 0, 1, 1], [], []>} : vector<8x16xf32>, vector<16x8xf32>, vector<8x8xf32> -> vector<8x8xf32>
    %c2_19 = arith.constant 2 : index
    %c0_20 = arith.constant 0 : index
    %c0_21 = arith.constant 0 : index
    %34 = vector.load %arg3[%c2_19, %c0_20, %c0_21] : memref<8x8x8xf32, #tpu.memory_space<vmem>>, vector<1x8x8xf32>
    %35 = vector.shape_cast %34 : vector<1x8x8xf32> to vector<8x8xf32>
    %36 = vector.shape_cast %33 : vector<8x8xf32> to vector<1x8x8xf32>
    tpu.vector_store %arg3[%c2_19, %c0_20, %c0_21], %36 {strides = array<i32>} : memref<8x8x8xf32, #tpu.memory_space<vmem>>, vector<1x8x8xf32>,
    %c3 = arith.constant 3 : index
    %c0_22 = arith.constant 0 : index
    %c0_23 = arith.constant 0 : index
    %37 = vector.load %arg2[%c3, %c0_22, %c0_23] : memref<8x16x16xf32, #tpu.memory_space<vmem>>, vector<1x16x16xf32>
    %38 = vector.shape_cast %37 : vector<1x16x16xf32> to vector<16x16xf32>
    %cst_24 = arith.constant dense<0.000000e+00> : vector<16x8xf32>
    %39 = tpu.matmul %38, %15, %cst_24 {dimension_numbers = #tpu.dot_dimension_numbers<[1], [0], [0], [1], [0, 0, 1, 1], [], []>} : vector<16x16xf32>, vector<16x8xf32>, vector<16x8xf32> -> vector<16x8xf32>
    %cst_25 = arith.constant dense<0.000000e+00> : vector<8x8xf32>
    %40 = tpu.matmul %8, %39, %cst_25 {dimension_numbers = #tpu.dot_dimension_numbers<[1], [0], [0], [1], [0, 0, 1, 1], [], []>} : vector<8x16xf32>, vector<16x8xf32>, vector<8x8xf32> -> vector<8x8xf32>
    %c3_26 = arith.constant 3 : index
    %c0_27 = arith.constant 0 : index
    %c0_28 = arith.constant 0 : index
    %41 = vector.load %arg3[%c3_26, %c0_27, %c0_28] : memref<8x8x8xf32, #tpu.memory_space<vmem>>, vector<1x8x8xf32>
    %42 = vector.shape_cast %41 : vector<1x8x8xf32> to vector<8x8xf32>
    %43 = vector.shape_cast %40 : vector<8x8xf32> to vector<1x8x8xf32>
    tpu.vector_store %arg3[%c3_26, %c0_27, %c0_28], %43 {strides = array<i32>} : memref<8x8x8xf32, #tpu.memory_space<vmem>>, vector<1x8x8xf32>,
    %c4 = arith.constant 4 : index
    %c0_29 = arith.constant 0 : index
    %c0_30 = arith.constant 0 : index
    %44 = vector.load %arg2[%c4, %c0_29, %c0_30] : memref<8x16x16xf32, #tpu.memory_space<vmem>>, vector<1x16x16xf32>
    %45 = vector.shape_cast %44 : vector<1x16x16xf32> to vector<16x16xf32>
    %cst_31 = arith.constant dense<0.000000e+00> : vector<16x8xf32>
    %46 = tpu.matmul %45, %15, %cst_31 {dimension_numbers = #tpu.dot_dimension_numbers<[1], [0], [0], [1], [0, 0, 1, 1], [], []>} : vector<16x16xf32>, vector<16x8xf32>, vector<16x8xf32> -> vector<16x8xf32>
    %cst_32 = arith.constant dense<0.000000e+00> : vector<8x8xf32>
    %47 = tpu.matmul %8, %46, %cst_32 {dimension_numbers = #tpu.dot_dimension_numbers<[1], [0], [0], [1], [0, 0, 1, 1], [], []>} : vector<8x16xf32>, vector<16x8xf32>, vector<8x8xf32> -> vector<8x8xf32>
    %c4_33 = arith.constant 4 : index
    %c0_34 = arith.constant 0 : index
    %c0_35 = arith.constant 0 : index
    %48 = vector.load %arg3[%c4_33, %c0_34, %c0_35] : memref<8x8x8xf32, #tpu.memory_space<vmem>>, vector<1x8x8xf32>
    %49 = vector.shape_cast %48 : vector<1x8x8xf32> to vector<8x8xf32>
    %50 = vector.shape_cast %47 : vector<8x8xf32> to vector<1x8x8xf32>
    tpu.vector_store %arg3[%c4_33, %c0_34, %c0_35], %50 {strides = array<i32>} : memref<8x8x8xf32, #tpu.memory_space<vmem>>, vector<1x8x8xf32>,
    %c5 = arith.constant 5 : index
    %c0_36 = arith.constant 0 : index
    %c0_37 = arith.constant 0 : index
    %51 = vector.load %arg2[%c5, %c0_36, %c0_37] : memref<8x16x16xf32, #tpu.memory_space<vmem>>, vector<1x16x16xf32>
    %52 = vector.shape_cast %51 : vector<1x16x16xf32> to vector<16x16xf32>
    %cst_38 = arith.constant dense<0.000000e+00> : vector<16x8xf32>
    %53 = tpu.matmul %52, %15, %cst_38 {dimension_numbers = #tpu.dot_dimension_numbers<[1], [0], [0], [1], [0, 0, 1, 1], [], []>} : vector<16x16xf32>, vector<16x8xf32>, vector<16x8xf32> -> vector<16x8xf32>
    %cst_39 = arith.constant dense<0.000000e+00> : vector<8x8xf32>
    %54 = tpu.matmul %8, %53, %cst_39 {dimension_numbers = #tpu.dot_dimension_numbers<[1], [0], [0], [1], [0, 0, 1, 1], [], []>} : vector<8x16xf32>, vector<16x8xf32>, vector<8x8xf32> -> vector<8x8xf32>
    %c5_40 = arith.constant 5 : index
    %c0_41 = arith.constant 0 : index
    %c0_42 = arith.constant 0 : index
    %55 = vector.load %arg3[%c5_40, %c0_41, %c0_42] : memref<8x8x8xf32, #tpu.memory_space<vmem>>, vector<1x8x8xf32>
    %56 = vector.shape_cast %55 : vector<1x8x8xf32> to vector<8x8xf32>
    %57 = vector.shape_cast %54 : vector<8x8xf32> to vector<1x8x8xf32>
    tpu.vector_store %arg3[%c5_40, %c0_41, %c0_42], %57 {strides = array<i32>} : memref<8x8x8xf32, #tpu.memory_space<vmem>>, vector<1x8x8xf32>,
    %c6 = arith.constant 6 : index
    %c0_43 = arith.constant 0 : index
    %c0_44 = arith.constant 0 : index
    %58 = vector.load %arg2[%c6, %c0_43, %c0_44] : memref<8x16x16xf32, #tpu.memory_space<vmem>>, vector<1x16x16xf32>
    %59 = vector.shape_cast %58 : vector<1x16x16xf32> to vector<16x16xf32>
    %cst_45 = arith.constant dense<0.000000e+00> : vector<16x8xf32>
    %60 = tpu.matmul %59, %15, %cst_45 {dimension_numbers = #tpu.dot_dimension_numbers<[1], [0], [0], [1], [0, 0, 1, 1], [], []>} : vector<16x16xf32>, vector<16x8xf32>, vector<16x8xf32> -> vector<16x8xf32>
    %cst_46 = arith.constant dense<0.000000e+00> : vector<8x8xf32>
    %61 = tpu.matmul %8, %60, %cst_46 {dimension_numbers = #tpu.dot_dimension_numbers<[1], [0], [0], [1], [0, 0, 1, 1], [], []>} : vector<8x16xf32>, vector<16x8xf32>, vector<8x8xf32> -> vector<8x8xf32>
    %c6_47 = arith.constant 6 : index
    %c0_48 = arith.constant 0 : index
    %c0_49 = arith.constant 0 : index
    %62 = vector.load %arg3[%c6_47, %c0_48, %c0_49] : memref<8x8x8xf32, #tpu.memory_space<vmem>>, vector<1x8x8xf32>
    %63 = vector.shape_cast %62 : vector<1x8x8xf32> to vector<8x8xf32>
    %64 = vector.shape_cast %61 : vector<8x8xf32> to vector<1x8x8xf32>
    tpu.vector_store %arg3[%c6_47, %c0_48, %c0_49], %64 {strides = array<i32>} : memref<8x8x8xf32, #tpu.memory_space<vmem>>, vector<1x8x8xf32>,
    %c7 = arith.constant 7 : index
    %c0_50 = arith.constant 0 : index
    %c0_51 = arith.constant 0 : index
    %65 = vector.load %arg2[%c7, %c0_50, %c0_51] : memref<8x16x16xf32, #tpu.memory_space<vmem>>, vector<1x16x16xf32>
    %66 = vector.shape_cast %65 : vector<1x16x16xf32> to vector<16x16xf32>
    %cst_52 = arith.constant dense<0.000000e+00> : vector<16x8xf32>
    %67 = tpu.matmul %66, %15, %cst_52 {dimension_numbers = #tpu.dot_dimension_numbers<[1], [0], [0], [1], [0, 0, 1, 1], [], []>} : vector<16x16xf32>, vector<16x8xf32>, vector<16x8xf32> -> vector<16x8xf32>
    %cst_53 = arith.constant dense<0.000000e+00> : vector<8x8xf32>
    %68 = tpu.matmul %8, %67, %cst_53 {dimension_numbers = #tpu.dot_dimension_numbers<[1], [0], [0], [1], [0, 0, 1, 1], [], []>} : vector<8x16xf32>, vector<16x8xf32>, vector<8x8xf32> -> vector<8x8xf32>
    %c7_54 = arith.constant 7 : index
    %c0_55 = arith.constant 0 : index
    %c0_56 = arith.constant 0 : index
    %69 = vector.load %arg3[%c7_54, %c0_55, %c0_56] : memref<8x8x8xf32, #tpu.memory_space<vmem>>, vector<1x8x8xf32>
    %70 = vector.shape_cast %69 : vector<1x8x8xf32> to vector<8x8xf32>
    %71 = vector.shape_cast %68 : vector<8x8xf32> to vector<1x8x8xf32>
    tpu.vector_store %arg3[%c7_54, %c0_55, %c0_56], %71 {strides = array<i32>} : memref<8x8x8xf32, #tpu.memory_space<vmem>>, vector<1x8x8xf32>,
    return
  }
  func.func @transform_0(%arg0: i32, %arg1: memref<2xi32, #tpu.memory_space<smem>>) -> (i32, i32, i32) {
    %c0_i32 = arith.constant 0 : i32
    %c0_i32_0 = arith.constant 0 : i32
    %c0_i32_1 = arith.constant 0 : i32
    return %arg0, %c0_i32, %c0_i32_0 : i32, i32, i32
  }
  func.func @transform_1(%arg0: i32, %arg1: memref<2xi32, #tpu.memory_space<smem>>) -> (i32, i32, i32) {
    %c0_i32 = arith.constant 0 : i32
    %c0_i32_0 = arith.constant 0 : i32
    %c0_i32_1 = arith.constant 0 : i32
    return %arg0, %c0_i32, %c0_i32_0 : i32, i32, i32
  }
}

</mosaic_0001>

<bundles_post_ra>
// kernel: tpu_custom_call.1
= control target key start
LH: loop header
LB: loop body
LE: loop exit
PB: predicated region body
PF: predicated region fallthrough
CT: control target
= control target key end

     0   :  { %s1590_s9 = smov [#allocation3]   ;;  %s1774_s0 = inlined_call_operand.hbm [shape: s32[2], index: 0, kind: input, shape index: {}]   ;;  %s1775_s1 = inlined_call_operand.hbm [shape: f32[8,16,16], index: 1, kind: input, shape index: {}]   ;;  %s1776_s2 = inlined_call_operand.hbm [shape: f32[8,8,8], index: 2, kind: output, shape index: {}]  }
   0x1   :  { %8 = dma.hbm_to_smem %s1774_s0, 16, %s1590_s9, [#allocation2] }
   0x2   :  { %1584 = dma.done.wait [#allocation2], 16 }
   0x3   :  { %1585 = vsyncadd [#allocation2], 4294967280 }
   0x4   :  { %10 = sfence }
   0x5   :  { %11 = vsyncpa [#allocation5], 0 }
   0x6   :  { %12 = vsyncpa [#allocation6], 0  ;;  %s1591_s12 = smov [#allocation4]  }
   0x7   :  { %s18_s13 = sshll.u32 %s1591_s12, 4  ;;  %s19_s13 = int_to_ptr.vmem [resolvable:$true] %s18_s13 }
   0x8   :  { %s1552_s14 = scalar_lea.vmem %s19_s13, 2048  ;;  %p1557_p1 = scmp.lt.s32.totalorder %s19_s13, %s19_s13 }
   0x9   :  { %p1553_p0 = scmp.ne.s32.totalorder %s19_s13, %s1552_s14  ;;  %p1558_p2 = scmp.lt.s32.totalorder %s1552_s14, %s1552_s14 }
   0xb   :  { %p1559_p3 = por %p1558_p2, %p1557_p1 }
   0xd   :  { %p1560_p4 = pnand %p1559_p3, %p1553_p0 }
   0xf   :  { %1563 = shalt.err (!%p1560_p4)
}
  0x10   :  { %s1592_s15 = smov 128   ;;  %s1593_s16 = smov 8  }
  0x11   :  { %24 = dma.hbm_to_vmem [thread:$0]  %s1775_s1, 2048, %s19_s13, [#allocation5], %s1592_s15, %s1592_s15, %s1593_s16  }
  0x12   :  { %1586 = dma.done.wait [#allocation5], 2048  }
  0x13   :  { %1587 = vsyncadd [#allocation5], 4294965248  ;;  %v30_v0 = vlaneseq  ;;  %s1316_s18 = sld [smem:[#allocation3 + $0x1]]  ;;  %vm50_vm0 = vcmask 130048   ;;  %v48_v5 = vld [vmem:[#allocation4] sm:$0xff]  ;;  %v1594_v9 = vmov 1.0  }
  0x14   :  { %1420 = vmatprep.mubr.msk.f32.mxu0 %vm50_vm0, %v48_v5  ;;  %v49_v10 = vld [vmem:[#allocation4 + $0x8] sm:$0xff]  ;;  %v208_v11 = vld [vmem:[#allocation4 + $0x10] sm:$0xff]  ;;  %v209_v12 = vld [vmem:[#allocation4 + $0x18] sm:$0xff]  ;;  %v1595_v25 = vmov 0.0   ;;  %vm1596_vm3 = vmmov 0   ;;  %s28_s1 = sld [smem:[#allocation3]] }
  0x15   :  { %v1622_v1 = vshrl.u32 %v30_v0, 7  ;;  %v1624_v2 = vand.u32 127, %v30_v0  ;;  %v364_v13 = vld [vmem:[#allocation4 + $0x20] sm:$0xff]  ;;  %v365_v14 = vld [vmem:[#allocation4 + $0x28] sm:$0xff]  ;;  %v520_v15 = vld [vmem:[#allocation4 + $0x30] sm:$0xff]  ;;  %1423 = vmatprep.subr.mxu1 %v1595_v25  ;;  %1427 = vmatprep.mubr.msk.f32.mxu1 %vm1596_vm3, %v1595_v25  ;;  %vm205_vm5 = vcmask 64512  }
  0x16   :  { %v521_v16 = vld [vmem:[#allocation4 + $0x38] sm:$0xff]  ;;  %v676_v17 = vld [vmem:[#allocation4 + $0x40] sm:$0xff]  ;;  %v677_v18 = vld [vmem:[#allocation4 + $0x48] sm:$0xff]  ;;  %s1597_s19 = smov [#allocation7]  }
  0x17   :  { %v39_v3 = vadd.s32 8, %v1622_v1  ;;  %v832_v19 = vld [vmem:[#allocation4 + $0x50] sm:$0xff]  ;;  %v833_v20 = vld [vmem:[#allocation4 + $0x58] sm:$0xff]  ;;  %v988_v21 = vld [vmem:[#allocation4 + $0x60] sm:$0xff]  ;;  %s1304_s20 = sshll.u32 %s1597_s19, 4  ;;  %s1305_s20 = int_to_ptr.vmem [resolvable:$true] %s1304_s20 }
  0x18   :  { %v989_v22 = vld [vmem:[#allocation4 + $0x68] sm:$0xff]  ;;  %v1144_v23 = vld [vmem:[#allocation4 + $0x70] sm:$0xff]  ;;  %v1145_v24 = vld [vmem:[#allocation4 + $0x78] sm:$0xff]  ;;  %s1564_s21 = scalar_lea.vmem %s1305_s20, 1024  ;;  %p1569_p6 = scmp.lt.s32.totalorder %s1305_s20, %s1305_s20 }
  0x19   :  { %v40_v4 = vstv %s1316_s18  ;;  %p1565_p5 = scmp.ne.s32.totalorder %s1305_s20, %s1564_s21  ;;  %p1570_p7 = scmp.lt.s32.totalorder %s1564_s21, %s1564_s21 }
  0x1a   :  { %v41_v6 = vadd.s32 %v40_v4, %v1624_v2  ;;  %v34_v26 = vstv %s28_s1 }
  0x1b   :  { %v35_v27 = vadd.s32 %v34_v26, %v1622_v1  ;;  %p1571_p8 = por %p1570_p7, %p1569_p6 }
  0x1c   :  { %vm1629_vm1 = vcmp.eq.s32.totalorder %v39_v3, %v41_v6  ;;  %vm1634_vm2 = vcmp.eq.s32.totalorder %v1622_v1, %v41_v6 }
  0x1d   :  { %1416 = vmatprep.subr.msk.mxu0 %vm1629_vm1, %v1594_v9  ;;  %vm36_vm4 = vcmp.eq.s32.totalorder %v1624_v2, %v35_v27  ;;  %p1572_p9 = pnand %p1571_p8, %p1565_p5 }
  0x1e   :  { %1417 = vmatpush3.msk.msra.mxu0 %vm1629_vm1, %v1594_v9  ;;  %v1317_v29 = vsel %vm36_vm4, 1.0, %v1595_v25 }
  0x1f   :  { %1418 = vmatprep.subr.msk.mxu0 %vm1634_vm2, %v1594_v9 }
  0x20   :  { %1419 = vmatpush3.msk.msra.mxu0 %vm1634_vm2, %v1594_v9 }
  0x21   :  { %1421 = vmatmul.mubr.msk.f32.vlgmr.msra.gmra.mxu0 %vm50_vm0, %v49_v10  ;;  %1430 = vmatprep.subr.msk.mxu0 %vm1629_vm1, %v1594_v9 }
  0x22   :  { %1431 = vmatpush3.msk.msra.mxu0 %vm1629_vm1, %v1594_v9  ;;  %1434 = vmatprep.mubr.msk.f32.mxu0 %vm50_vm0, %v208_v11 }
  0x23   :  { %1432 = vmatprep.subr.msk.mxu0 %vm1634_vm2, %v1594_v9 }
  0x24   :  { %1433 = vmatpush3.msk.msra.mxu0 %vm1634_vm2, %v1594_v9 }
  0x25   :  { %1435 = vmatmul.mubr.msk.f32.vlgmr.msra.gmra.mxu0 %vm50_vm0, %v209_v12  ;;  %1444 = vmatprep.subr.msk.mxu0 %vm1629_vm1, %v1594_v9 }
  0x26   :  { %1445 = vmatpush3.msk.msra.mxu0 %vm1629_vm1, %v1594_v9  ;;  %1448 = vmatprep.mubr.msk.f32.mxu0 %vm50_vm0, %v364_v13 }
  0x27   :  { %1446 = vmatprep.subr.msk.mxu0 %vm1634_vm2, %v1594_v9 }
  0x28   :  { %1447 = vmatpush3.msk.msra.mxu0 %vm1634_vm2, %v1594_v9 }
  0x29   :  { %1449 = vmatmul.mubr.msk.f32.vlgmr.msra.gmra.mxu0 %vm50_vm0, %v365_v14  ;;  %1458 = vmatprep.subr.msk.mxu0 %vm1629_vm1, %v1594_v9 }
  0x2a   :  { %1459 = vmatpush3.msk.msra.mxu0 %vm1629_vm1, %v1594_v9  ;;  %1462 = vmatprep.mubr.msk.f32.mxu0 %vm50_vm0, %v520_v15 }
  0x2b   :  { %1460 = vmatprep.subr.msk.mxu0 %vm1634_vm2, %v1594_v9 }
  0x2c   :  { %1461 = vmatpush3.msk.msra.mxu0 %vm1634_vm2, %v1594_v9 }
  0x2d   :  { %1463 = vmatmul.mubr.msk.f32.vlgmr.msra.gmra.mxu0 %vm50_vm0, %v521_v16  ;;  %1472 = vmatprep.subr.msk.mxu0 %vm1629_vm1, %v1594_v9 }
  0x2e   :  { %1473 = vmatpush3.msk.msra.mxu0 %vm1629_vm1, %v1594_v9  ;;  %1476 = vmatprep.mubr.msk.f32.mxu0 %vm50_vm0, %v676_v17 }
  0x2f   :  { %1474 = vmatprep.subr.msk.mxu0 %vm1634_vm2, %v1594_v9 }
  0x30   :  { %1475 = vmatpush3.msk.msra.mxu0 %vm1634_vm2, %v1594_v9 }
  0x31   :  { %1477 = vmatmul.mubr.msk.f32.vlgmr.msra.gmra.mxu0 %vm50_vm0, %v677_v18  ;;  %1486 = vmatprep.subr.msk.mxu0 %vm1629_vm1, %v1594_v9 }
  0x32   :  { %1487 = vmatpush3.msk.msra.mxu0 %vm1629_vm1, %v1594_v9  ;;  %1490 = vmatprep.mubr.msk.f32.mxu0 %vm50_vm0, %v832_v19 }
  0x33   :  { %1488 = vmatprep.subr.msk.mxu0 %vm1634_vm2, %v1594_v9 }
  0x34   :  { %1489 = vmatpush3.msk.msra.mxu0 %vm1634_vm2, %v1594_v9 }
  0x35   :  { %1491 = vmatmul.mubr.msk.f32.vlgmr.msra.gmra.mxu0 %vm50_vm0, %v833_v20  ;;  %1500 = vmatprep.subr.msk.mxu0 %vm1629_vm1, %v1594_v9 }
  0x36   :  { %1501 = vmatpush3.msk.msra.mxu0 %vm1629_vm1, %v1594_v9  ;;  %1504 = vmatprep.mubr.msk.f32.mxu0 %vm50_vm0, %v988_v21 }
  0x37   :  { %1502 = vmatprep.subr.msk.mxu0 %vm1634_vm2, %v1594_v9 }
  0x38   :  { %1503 = vmatpush3.msk.msra.mxu0 %vm1634_vm2, %v1594_v9 }
  0x39   :  { %1505 = vmatmul.mubr.msk.f32.vlgmr.msra.gmra.mxu0 %vm50_vm0, %v989_v22  ;;  %1514 = vmatprep.subr.msk.mxu0 %vm1629_vm1, %v1594_v9 }
  0x3a   :  { %1515 = vmatpush3.msk.msra.mxu0 %vm1629_vm1, %v1594_v9  ;;  %1518 = vmatprep.mubr.msk.f32.mxu0 %vm50_vm0, %v1144_v23 }
  0x3b   :  { %1516 = vmatprep.subr.msk.mxu0 %vm1634_vm2, %v1594_v9 }
  0x3c   :  { %1517 = vmatpush3.msk.msra.mxu0 %vm1634_vm2, %v1594_v9 }
  0x3d   :  { %1519 = vmatmul.mubr.msk.f32.vlgmr.msra.gmra.mxu0 %vm50_vm0, %v1145_v24 }
  0xe1   :  { %v1422_v28 = vpop.f32.mrf.mxu0 }
  0xe2   :  { %1424 = vmatpush3.msra.mxu1 %v1422_v28 }
  0xe3   :  { %v123_v30 = vpop.f32.mrf.mxu0  ;;  %1425 = vmatprep.subr.mxu1 %v1595_v25 }
  0xe4   :  { %1426 = vmatpush3.msra.mxu1 %v123_v30 }
  0xe5   :  { %1428 = vmatmul.mubr.msk.f32.vlgmr.msra.gmra.mxu1 %vm50_vm0, %v1317_v29  ;;  %v1436_v31 = vpop.f32.mrf.mxu0  ;;  %1437 = vmatprep.subr.mxu1 %v1595_v25 }
  0xe6   :  { %1438 = vmatpush3.msra.mxu1 %v1436_v31  ;;  %1441 = vmatprep.mubr.msk.f32.mxu1 %vm1596_vm3, %v1595_v25 }
  0xe7   :  { %v282_v32 = vpop.f32.mrf.mxu0  ;;  %1439 = vmatprep.subr.mxu1 %v1595_v25 }
  0xe8   :  { %1440 = vmatpush3.msra.mxu1 %v282_v32 }
  0xe9   :  { %1442 = vmatmul.mubr.msk.f32.vlgmr.msra.gmra.mxu1 %vm50_vm0, %v1317_v29  ;;  %v1450_v33 = vpop.f32.mrf.mxu0  ;;  %1451 = vmatprep.subr.mxu1 %v1595_v25 }
  0xea   :  { %1452 = vmatpush3.msra.mxu1 %v1450_v33  ;;  %1455 = vmatprep.mubr.msk.f32.mxu1 %vm1596_vm3, %v1595_v25 }
  0xeb   :  { %v438_v34 = vpop.f32.mrf.mxu0  ;;  %1453 = vmatprep.subr.mxu1 %v1595_v25 }
  0xec   :  { %1454 = vmatpush3.msra.mxu1 %v438_v34 }
  0xed   :  { %1456 = vmatmul.mubr.msk.f32.vlgmr.msra.gmra.mxu1 %vm50_vm0, %v1317_v29  ;;  %v1464_v35 = vpop.f32.mrf.mxu0  ;;  %1465 = vmatprep.subr.mxu1 %v1595_v25 }
  0xee   :  { %1466 = vmatpush3.msra.mxu1 %v1464_v35  ;;  %1469 = vmatprep.mubr.msk.f32.mxu1 %vm1596_vm3, %v1595_v25 }
  0xef   :  { %v594_v36 = vpop.f32.mrf.mxu0  ;;  %1467 = vmatprep.subr.mxu1 %v1595_v25 }
  0xf0   :  { %1468 = vmatpush3.msra.mxu1 %v594_v36 }
  0xf1   :  { %1470 = vmatmul.mubr.msk.f32.vlgmr.msra.gmra.mxu1 %vm50_vm0, %v1317_v29  ;;  %v1478_v37 = vpop.f32.mrf.mxu0  ;;  %1479 = vmatprep.subr.mxu1 %v1595_v25 }
  0xf2   :  { %1480 = vmatpush3.msra.mxu1 %v1478_v37  ;;  %1483 = vmatprep.mubr.msk.f32.mxu1 %vm1596_vm3, %v1595_v25 }
  0xf3   :  { %v750_v38 = vpop.f32.mrf.mxu0  ;;  %1481 = vmatprep.subr.mxu1 %v1595_v25 }
  0xf4   :  { %1482 = vmatpush3.msra.mxu1 %v750_v38 }
  0xf5   :  { %1484 = vmatmul.mubr.msk.f32.vlgmr.msra.gmra.mxu1 %vm50_vm0, %v1317_v29  ;;  %v1492_v39 = vpop.f32.mrf.mxu0  ;;  %1493 = vmatprep.subr.mxu1 %v1595_v25 }
  0xf6   :  { %1494 = vmatpush3.msra.mxu1 %v1492_v39  ;;  %1497 = vmatprep.mubr.msk.f32.mxu1 %vm1596_vm3, %v1595_v25 }
  0xf7   :  { %v906_v40 = vpop.f32.mrf.mxu0  ;;  %1495 = vmatprep.subr.mxu1 %v1595_v25 }
  0xf8   :  { %1496 = vmatpush3.msra.mxu1 %v906_v40 }
  0xf9   :  { %1498 = vmatmul.mubr.msk.f32.vlgmr.msra.gmra.mxu1 %vm50_vm0, %v1317_v29  ;;  %v1506_v41 = vpop.f32.mrf.mxu0  ;;  %1507 = vmatprep.subr.mxu1 %v1595_v25 }
  0xfa   :  { %1508 = vmatpush3.msra.mxu1 %v1506_v41  ;;  %1511 = vmatprep.mubr.msk.f32.mxu1 %vm1596_vm3, %v1595_v25 }
  0xfb   :  { %v1062_v42 = vpop.f32.mrf.mxu0  ;;  %1509 = vmatprep.subr.mxu1 %v1595_v25 }
  0xfc   :  { %1510 = vmatpush3.msra.mxu1 %v1062_v42 }
  0xfd   :  { %1512 = vmatmul.mubr.msk.f32.vlgmr.msra.gmra.mxu1 %vm50_vm0, %v1317_v29  ;;  %v1520_v43 = vpop.f32.mrf.mxu0  ;;  %1521 = vmatprep.subr.mxu1 %v1595_v25 }
  0xfe   :  { %1522 = vmatpush3.msra.mxu1 %v1520_v43  ;;  %1525 = vmatprep.mubr.msk.f32.mxu1 %vm1596_vm3, %v1595_v25 }
  0xff   :  { %v1218_v44 = vpop.f32.mrf.mxu0  ;;  %1523 = vmatprep.subr.mxu1 %v1595_v25 }
 0x100   :  { %1524 = vmatpush3.msra.mxu1 %v1218_v44 }
 0x101   :  { %1526 = vmatmul.mubr.msk.f32.vlgmr.msra.gmra.mxu1 %vm50_vm0, %v1317_v29 }
 0x1a5   :  { %v201_v45 = vpop.f32.mrf.mxu1 }
 0x1a6   :  { %206 = vst.msk [vmem:[#allocation7] sm:$0xff] %vm205_vm5, %v201_v45 }
 0x1a7   :  { %v1429_v46 = vpop.f32.mrf.mxu1 }
 0x1a9   :  { %v357_v47 = vpop.f32.mrf.mxu1 }
 0x1aa   :  { %362 = vst.msk [vmem:[#allocation7 + $0x8] sm:$0xff] %vm205_vm5, %v357_v47 }
 0x1ab   :  { %v1443_v48 = vpop.f32.mrf.mxu1 }
 0x1ad   :  { %v513_v49 = vpop.f32.mrf.mxu1 }
 0x1ae   :  { %518 = vst.msk [vmem:[#allocation7 + $0x10] sm:$0xff] %vm205_vm5, %v513_v49 }
 0x1af   :  { %v1457_v50 = vpop.f32.mrf.mxu1 }
 0x1b1   :  { %v669_v51 = vpop.f32.mrf.mxu1 }
 0x1b2   :  { %674 = vst.msk [vmem:[#allocation7 + $0x18] sm:$0xff] %vm205_vm5, %v669_v51 }
 0x1b3   :  { %v1471_v52 = vpop.f32.mrf.mxu1 }
 0x1b5   :  { %v825_v53 = vpop.f32.mrf.mxu1 }
 0x1b6   :  { %830 = vst.msk [vmem:[#allocation7 + $0x20] sm:$0xff] %vm205_vm5, %v825_v53 }
 0x1b7   :  { %v1485_v54 = vpop.f32.mrf.mxu1 }
 0x1b9   :  { %v981_v55 = vpop.f32.mrf.mxu1 }
 0x1ba   :  { %986 = vst.msk [vmem:[#allocation7 + $0x28] sm:$0xff] %vm205_vm5, %v981_v55 }
 0x1bb   :  { %v1499_v56 = vpop.f32.mrf.mxu1 }
 0x1bd   :  { %v1137_v57 = vpop.f32.mrf.mxu1 }
 0x1be   :  { %1142 = vst.msk [vmem:[#allocation7 + $0x30] sm:$0xff] %vm205_vm5, %v1137_v57 }
 0x1bf   :  { %v1513_v58 = vpop.f32.mrf.mxu1 }
 0x1c1   :  { %v1293_v59 = vpop.f32.mrf.mxu1 }
 0x1c2   :  { %1298 = vst.msk [vmem:[#allocation7 + $0x38] sm:$0xff] %vm205_vm5, %v1293_v59 }
 0x1c3   :  { %v1527_v60 = vpop.f32.mrf.mxu1 }
 0x1c4   :  { %1575 = shalt.err (!%p1572_p9)
}
 0x1c5   :  { %1310 = dma.vmem_to_hbm [thread:$0]  %s1305_s20, 1024, %s1776_s2, [#allocation6], %s1592_s15, %s1592_s15, %s1593_s16  }
 0x1c6   :  { %1588 = dma.done.wait [#allocation6], 1024  }
 0x1c7   :  { %1589 = vsyncadd [#allocation6], 4294966272 }
 0x1c8   :  { %1314 = vsyncpa [#allocation5], 1 }
 0x1c9   :  { %1315 = vsyncpa [#allocation6], 1 }

</bundles_post_ra>
